<compile_context>
chip_gen: v6e
topology: v6e:2x2x1
jax: 0.10.0
libtpu: 0.0.40
codegen_flags: <defaults>
</compile_context>

<pallas_src>
import math
import functools

import jax
import jax.numpy as jnp
from jax import lax
from jax.experimental import pallas as pl
from jax.experimental.pallas import tpu as pltpu


def _round_up(x, m):
    return ((x + m - 1) // m) * m


def _apa_loss_kernel(x_ref, t_ref, p_ref, mrg_ref, out_ref,
                     pn_ref, p_acc, n_acc, cnt_acc,
                     *, nb_proxies, nb_classes, alpha, scale_margin,
                     matmul_dtype):
    i = pl.program_id(0)
    tile_n = x_ref.shape[0]
    c_pad = p_ref.shape[1]

    # -------- one-time setup: normalize + average + scale proxy banks -------
    @pl.when(i == 0)
    def _init():
        acc = jnp.zeros(pn_ref.shape, dtype=jnp.float32)
        for b in range(nb_proxies):                     # tiny static unroll
            p = p_ref[b].astype(jnp.float32)            # (C_pad, D_pad)
            inv = lax.rsqrt(jnp.sum(p * p, axis=1, keepdims=True) + 1e-12)
            acc = acc + p * inv
        # fold alpha and 1/nb_proxies into the proxy tile: MXU output == a*cos
        pn_ref[...] = (acc * jnp.float32(alpha / nb_proxies)).astype(pn_ref.dtype)
        p_acc[...] = jnp.zeros_like(p_acc)
        n_acc[...] = jnp.zeros_like(n_acc)
        cnt_acc[...] = jnp.zeros_like(cnt_acc)

    # -------- per-batch-tile work -------------------------------------------
    x = x_ref[...].astype(jnp.float32)                  # (tile_n, D_pad)
    inv = lax.rsqrt(jnp.sum(x * x, axis=1, keepdims=True) + 1e-12)
    xn = (x * inv).astype(matmul_dtype)

    # s = alpha * mean_cos, contracting embed dims directly (no transpose)
    s = lax.dot_general(xn, pn_ref[...],
                        dimension_numbers=(((1,), (1,)), ((), ())),
                        preferred_element_type=jnp.float32)   # (tile_n, C_pad)

    labels = t_ref[...]                                  # (tile_n, 1) int32
    col = lax.broadcasted_iota(jnp.int32, (tile_n, c_pad), 1)
    is_pos = labels == col                               # (tile_n, C_pad)
    row_valid = labels >= 0                              # padded rows -> -1
    col_valid = col < nb_classes                         # padded classes
    neg_mask = jnp.logical_and(jnp.logical_not(is_pos),
                               jnp.logical_and(row_valid, col_valid))

    # fused exponential:  pos: exp(-a*cos + a*mrg)   neg: exp(+a*cos + a*mrg)
    a_mrg = jnp.float32(alpha) * mrg_ref[...]            # (1, C_pad)
    e = jnp.exp(jnp.where(is_pos, -s, s) + a_mrg)        # single exp pass

    pos_f = is_pos.astype(jnp.float32)
    neg_f = neg_mask.astype(jnp.float32)
    p_acc[...] += jnp.sum(e * pos_f, axis=0, keepdims=True)
    n_acc[...] += jnp.sum(e * neg_f, axis=0, keepdims=True)
    cnt_acc[...] += jnp.sum(pos_f, axis=0, keepdims=True)

    # -------- finalize on last batch tile ------------------------------------
    @pl.when(i == pl.num_programs(0) - 1)
    def _fin():
        psum = p_acc[...]                                # (1, C_pad)
        nsum = n_acc[...]
        cnt = cnt_acc[...]
        # padded classes: psum/nsum == 0 -> log(1+0)=0, count==0 -> excluded
        num_valid = jnp.sum((cnt != 0.0).astype(jnp.float32))
        # TODO(synk): division by num_valid unguarded (matches torch semantics)
        pos_term = jnp.sum(jnp.log(1.0 + psum)) / num_valid
        neg_term = jnp.sum(jnp.log(1.0 + nsum)) / jnp.float32(nb_classes)
        # mrg padded with zeros -> sum over real classes only
        mean_mrg = jnp.sum(mrg_ref[...]) / jnp.float32(nb_classes)
        out_ref[0, 0] = pos_term + neg_term + jnp.float32(scale_margin) / mean_mrg


def adaptive_proxy_anchor_loss(X, T, proxies, mrg, *, alpha=32, scale_margin=10,
                               tile_n=None, matmul_dtype=jnp.float32):
    """X: (N, D) f32, T: (N,) int labels, proxies: (nb_proxies, C, D) f32,
       mrg: (C,) f32. Returns scalar f32 loss.
       matmul_dtype=jnp.bfloat16 doubles MXU throughput on v5e/v6e/v7x
       (elementwise math stays f32); default f32 for tightest accuracy."""
    N, D = X.shape
    nb_proxies, nb_classes, D2 = proxies.shape
    assert D == D2

    # lane-dense padding: classes/embed -> multiples of 128, batch -> tile_n
    c_pad = _round_up(nb_classes, 128)
    d_pad = _round_up(D, 128)
    if tile_n is None:
        tile_n = min(256, _round_up(N, 8))
    tile_n = _round_up(tile_n, 8)
    n_pad = _round_up(N, tile_n)

    Xp = jnp.zeros((n_pad, d_pad), jnp.float32).at[:N, :D].set(
        X.astype(jnp.float32))
    Pp = jnp.zeros((nb_proxies, c_pad, d_pad), jnp.float32).at[
        :, :nb_classes, :D].set(proxies.astype(jnp.float32))
    mrg2d = jnp.zeros((1, c_pad), jnp.float32).at[0, :nb_classes].set(
        mrg.astype(jnp.float32))
    # TODO(synk): torch stores mrg as float64; TPU kernel computes in float32.
    Tp = jnp.full((n_pad, 1), -1, jnp.int32).at[:N, 0].set(T.astype(jnp.int32))

    kernel = functools.partial(
        _apa_loss_kernel,
        nb_proxies=nb_proxies,
        nb_classes=nb_classes,
        alpha=float(alpha),
        scale_margin=float(scale_margin),
        matmul_dtype=matmul_dtype,
    )

    grid = (n_pad // tile_n,)
    out = pl.pallas_call(
        kernel,
        out_shape=jax.ShapeDtypeStruct((1, 1), jnp.float32),
        grid=grid,
        in_specs=[
            pl.BlockSpec((tile_n, d_pad), lambda i: (i, 0)),          # X tile
            pl.BlockSpec((tile_n, 1), lambda i: (i, 0)),              # labels
            pl.BlockSpec((nb_proxies, c_pad, d_pad), lambda i: (0, 0, 0)),
            pl.BlockSpec((1, c_pad), lambda i: (0, 0)),               # mrg
        ],
        out_specs=pl.BlockSpec(memory_space=pltpu.MemorySpace.SMEM),
        scratch_shapes=[
            pltpu.VMEM((c_pad, d_pad), matmul_dtype),   # averaged scaled proxies
            pltpu.VMEM((1, c_pad), jnp.float32),        # pos sim accumulator
            pltpu.VMEM((1, c_pad), jnp.float32),        # neg sim accumulator
            pltpu.VMEM((1, c_pad), jnp.float32),        # class counts
        ],
        compiler_params=pltpu.CompilerParams(
            dimension_semantics=("arbitrary",)),
    )(Xp, Tp, Pp, mrg2d)
    return out[0, 0]


def _reference_loss(X, T, proxies, mrg, *, alpha=32, scale_margin=10):
    # pure-JAX reference mirroring the torch forward (f32)
    nb_proxies, nb_classes, _ = proxies.shape

    def l2n(v):
        return v / jnp.sqrt(jnp.sum(v * v, axis=1, keepdims=True) + 1e-12)

    cos = jnp.mean(
        jnp.stack([l2n(X) @ l2n(proxies[i]).T for i in range(nb_proxies)]),
        axis=0)
    P = (T[:, None] == jnp.arange(nb_classes)[None, :]).astype(jnp.float32)
    pos_exp = jnp.exp(-alpha * (cos - mrg[None, :]))
    neg_exp = jnp.exp(alpha * (cos + mrg[None, :]))
    num_valid = jnp.sum((jnp.sum(P, axis=0) != 0).astype(jnp.float32))
    P_sim = jnp.sum(jnp.where(P == 1, pos_exp, 0.0), axis=0)
    N_sim = jnp.sum(jnp.where(P == 0, neg_exp, 0.0), axis=0)
    pos_term = jnp.sum(jnp.log(1.0 + P_sim)) / num_valid
    neg_term = jnp.sum(jnp.log(1.0 + N_sim)) / nb_classes
    return pos_term + neg_term + scale_margin / jnp.mean(mrg)


if __name__ == "__main__":
    # small, deterministic configuration
    nb_classes = 8
    sz_embed = 32
    nb_proxies = 2
    batch = 8
    mrg0 = 0.1
    alpha = 32
    scale_margin = 10

    key = jax.random.PRNGKey(0)
    kx, kp, kt = jax.random.split(key, 3)

    X = jax.random.normal(kx, (batch, sz_embed), dtype=jnp.float32)
    T = jax.random.randint(kt, (batch,), 0, nb_classes, dtype=jnp.int32)

    # kaiming_normal_ mode='fan_out' on (nb_classes, sz_embed): std=sqrt(2/C)
    std = math.sqrt(2.0 / nb_classes)
    proxies = jax.random.normal(
        kp, (nb_proxies, nb_classes, sz_embed), dtype=jnp.float32) * std
    mrg = jnp.full((nb_classes,), mrg0, dtype=jnp.float32)

    loss = adaptive_proxy_anchor_loss(
        X, T, proxies, mrg, alpha=alpha, scale_margin=scale_margin)
    loss = jax.block_until_ready(loss)

    ref = _reference_loss(
        X, T, proxies, mrg, alpha=alpha, scale_margin=scale_margin)
    assert jnp.allclose(loss, ref, rtol=1e-4, atol=1e-4), (loss, ref)

    print("KERNEL_OK")
</pallas_src>

<mosaic_0001>
module attributes {stable_mosaic.version = 11 : i64} {
  func.func @_apa_loss_kernel(%arg0: i32, %arg1: memref<8x128xf32, #tpu.memory_space<vmem>>, %arg2: memref<8x1xi32, #tpu.memory_space<vmem>>, %arg3: memref<2x128x128xf32, #tpu.memory_space<vmem>>, %arg4: memref<1x128xf32, #tpu.memory_space<vmem>>, %arg5: memref<1x1xf32, #tpu.memory_space<smem>>, %arg6: memref<128x128xf32, #tpu.memory_space<vmem>>, %arg7: memref<1x128xf32, #tpu.memory_space<vmem>>, %arg8: memref<1x128xf32, #tpu.memory_space<vmem>>, %arg9: memref<1x128xf32, #tpu.memory_space<vmem>>) attributes {dimension_semantics = [#tpu.dimension_semantics<arbitrary>], iteration_bounds = array<i64: 1>, scalar_prefetch = 0 : i64, scratch_operands = 4 : i64, tpu.core_type = #tpu.core_type<tc>, window_params = [{transform_indices = @transform_0, window_bounds = array<i64: 8, 128>}, {transform_indices = @transform_1, window_bounds = array<i64: 8, 1>}, {pipeline_mode = #tpu.pipeline_mode<synchronous>, transform_indices = @transform_2, window_bounds = array<i64: 2, 128, 128>}, {pipeline_mode = #tpu.pipeline_mode<synchronous>, transform_indices = @transform_3, window_bounds = array<i64: 1, 128>}, {transform_indices = @transform_4, window_bounds = array<i64: 1, 1>}]} {
    %c0_i32 = arith.constant 0 : i32
    %0 = arith.cmpi eq, %arg0, %c0_i32 : i32
    %1 = arith.extui %0 : i1 to i32
    %c0_i32_0 = arith.constant 0 : i32
    %2 = arith.cmpi ne, %1, %c0_i32_0 : i32
    scf.if %2 {
      %cst_31 = arith.constant 0.000000e+00 : f32
      %59 = vector.broadcast %cst_31 : f32 to vector<128x128xf32>
      %c0_32 = arith.constant 0 : index
      %c0_33 = arith.constant 0 : index
      %c0_34 = arith.constant 0 : index
      %60 = vector.load %arg3[%c0_32, %c0_33, %c0_34] : memref<2x128x128xf32, #tpu.memory_space<vmem>>, vector<1x128x128xf32>
      %61 = vector.shape_cast %60 : vector<1x128x128xf32> to vector<128x128xf32>
      %62 = arith.mulf %61, %61 : vector<128x128xf32>
      %cst_35 = arith.constant dense<0.000000e+00> : vector<128xf32>
      %63 = vector.multi_reduction <add>, %62, %cst_35 [1] : vector<128x128xf32> to vector<128xf32>
      %64 = vector.shape_cast %63 : vector<128xf32> to vector<128x1xf32>
      %cst_36 = arith.constant 9.99999996E-13 : f32
      %65 = vector.broadcast %cst_36 : f32 to vector<128x1xf32>
      %66 = arith.addf %64, %65 : vector<128x1xf32>
      %67 = math.rsqrt %66 : vector<128x1xf32>
      %68 = vector.broadcast %67 : vector<128x1xf32> to vector<128x128xf32>
      %69 = arith.mulf %61, %68 : vector<128x128xf32>
      %70 = arith.addf %59, %69 : vector<128x128xf32>
      %c1 = arith.constant 1 : index
      %c0_37 = arith.constant 0 : index
      %c0_38 = arith.constant 0 : index
      %71 = vector.load %arg3[%c1, %c0_37, %c0_38] : memref<2x128x128xf32, #tpu.memory_space<vmem>>, vector<1x128x128xf32>
      %72 = vector.shape_cast %71 : vector<1x128x128xf32> to vector<128x128xf32>
      %73 = arith.mulf %72, %72 : vector<128x128xf32>
      %cst_39 = arith.constant dense<0.000000e+00> : vector<128xf32>
      %74 = vector.multi_reduction <add>, %73, %cst_39 [1] : vector<128x128xf32> to vector<128xf32>
      %75 = vector.shape_cast %74 : vector<128xf32> to vector<128x1xf32>
      %cst_40 = arith.constant 9.99999996E-13 : f32
      %76 = vector.broadcast %cst_40 : f32 to vector<128x1xf32>
      %77 = arith.addf %75, %76 : vector<128x1xf32>
      %78 = math.rsqrt %77 : vector<128x1xf32>
      %79 = vector.broadcast %78 : vector<128x1xf32> to vector<128x128xf32>
      %80 = arith.mulf %72, %79 : vector<128x128xf32>
      %81 = arith.addf %70, %80 : vector<128x128xf32>
      %cst_41 = arith.constant 1.600000e+01 : f32
      %82 = vector.broadcast %cst_41 : f32 to vector<128x128xf32>
      %83 = arith.mulf %81, %82 : vector<128x128xf32>
      %c0_42 = arith.constant 0 : index
      %c0_43 = arith.constant 0 : index
      %84 = vector.load %arg6[%c0_42, %c0_43] : memref<128x128xf32, #tpu.memory_space<vmem>>, vector<128x128xf32>
      tpu.vector_store %arg6[%c0_42, %c0_43], %83 {strides = array<i32>} : memref<128x128xf32, #tpu.memory_space<vmem>>, vector<128x128xf32>,
      %cst_44 = arith.constant 0.000000e+00 : f32
      %85 = vector.broadcast %cst_44 : f32 to vector<1x128xf32>
      %c0_45 = arith.constant 0 : index
      %c0_46 = arith.constant 0 : index
      %86 = vector.load %arg7[%c0_45, %c0_46] : memref<1x128xf32, #tpu.memory_space<vmem>>, vector<1x128xf32>
      tpu.vector_store %arg7[%c0_45, %c0_46], %85 {strides = array<i32>} : memref<1x128xf32, #tpu.memory_space<vmem>>, vector<1x128xf32>,
      %cst_47 = arith.constant 0.000000e+00 : f32
      %87 = vector.broadcast %cst_47 : f32 to vector<1x128xf32>
      %c0_48 = arith.constant 0 : index
      %c0_49 = arith.constant 0 : index
      %88 = vector.load %arg8[%c0_48, %c0_49] : memref<1x128xf32, #tpu.memory_space<vmem>>, vector<1x128xf32>
      tpu.vector_store %arg8[%c0_48, %c0_49], %87 {strides = array<i32>} : memref<1x128xf32, #tpu.memory_space<vmem>>, vector<1x128xf32>,
      %cst_50 = arith.constant 0.000000e+00 : f32
      %89 = vector.broadcast %cst_50 : f32 to vector<1x128xf32>
      %c0_51 = arith.constant 0 : index
      %c0_52 = arith.constant 0 : index
      %90 = vector.load %arg9[%c0_51, %c0_52] : memref<1x128xf32, #tpu.memory_space<vmem>>, vector<1x128xf32>
      tpu.vector_store %arg9[%c0_51, %c0_52], %89 {strides = array<i32>} : memref<1x128xf32, #tpu.memory_space<vmem>>, vector<1x128xf32>,
    } else {
    }
    %c0 = arith.constant 0 : index
    %c0_1 = arith.constant 0 : index
    %3 = vector.load %arg1[%c0, %c0_1] : memref<8x128xf32, #tpu.memory_space<vmem>>, vector<8x128xf32>
    %4 = arith.mulf %3, %3 : vector<8x128xf32>
    %cst = arith.constant dense<0.000000e+00> : vector<8xf32>
    %5 = vector.multi_reduction <add>, %4, %cst [1] : vector<8x128xf32> to vector<8xf32>
    %6 = vector.shape_cast %5 : vector<8xf32> to vector<8x1xf32>
    %cst_2 = arith.constant 9.99999996E-13 : f32
    %7 = vector.broadcast %cst_2 : f32 to vector<8x1xf32>
    %8 = arith.addf %6, %7 : vector<8x1xf32>
    %9 = math.rsqrt %8 : vector<8x1xf32>
    %10 = vector.broadcast %9 : vector<8x1xf32> to vector<8x128xf32>
    %11 = arith.mulf %3, %10 : vector<8x128xf32>
    %c0_3 = arith.constant 0 : index
    %c0_4 = arith.constant 0 : index
    %12 = vector.load %arg6[%c0_3, %c0_4] : memref<128x128xf32, #tpu.memory_space<vmem>>, vector<128x128xf32>
    %cst_5 = arith.constant dense<0.000000e+00> : vector<8x128xf32>
    %13 = tpu.matmul %11, %12, %cst_5 {dimension_numbers = #tpu.dot_dimension_numbers<[1], [1], [0], [0], [0, 0, 1, 0], [], []>} : vector<8x128xf32>, vector<128x128xf32>, vector<8x128xf32> -> vector<8x128xf32>
    %c0_6 = arith.constant 0 : index
    %c0_7 = arith.constant 0 : index
    %14 = vector.load %arg2[%c0_6, %c0_7] : memref<8x1xi32, #tpu.memory_space<vmem>>, vector<8x1xi32>
    %15 = tpu.iota {dimensions = array<i32: 1>} : vector<8x128xi32>
    %16 = vector.broadcast %14 : vector<8x1xi32> to vector<8x128xi32>
    %17 = arith.cmpi eq, %16, %15 : vector<8x128xi32>
    %c0_i32_8 = arith.constant 0 : i32
    %18 = vector.broadcast %c0_i32_8 : i32 to vector<8x1xi32>
    %19 = arith.cmpi sge, %14, %18 : vector<8x1xi32>
    %c8_i32 = arith.constant 8 : i32
    %20 = vector.broadcast %c8_i32 : i32 to vector<8x128xi32>
    %21 = arith.cmpi slt, %15, %20 : vector<8x128xi32>
    %cst_9 = arith.constant dense<true> : vector<8x128xi1>
    %22 = arith.xori %17, %cst_9 : vector<8x128xi1>
    %23 = vector.broadcast %19 : vector<8x1xi1> to vector<8x128xi1>
    %24 = arith.andi %23, %21 : vector<8x128xi1>
    %25 = arith.andi %22, %24 : vector<8x128xi1>
    %c0_10 = arith.constant 0 : index
    %c0_11 = arith.constant 0 : index
    %26 = vector.load %arg4[%c0_10, %c0_11] : memref<1x128xf32, #tpu.memory_space<vmem>>, vector<1x128xf32>
    %cst_12 = arith.constant 3.200000e+01 : f32
    %27 = vector.broadcast %cst_12 : f32 to vector<1x128xf32>
    %28 = arith.mulf %27, %26 : vector<1x128xf32>
    %cst_13 = arith.constant 0.000000e+00 : f32
    %29 = vector.broadcast %cst_13 : f32 to vector<8x128xf32>
    %30 = arith.subf %29, %13 : vector<8x128xf32>
    %31 = arith.select %17, %30, %13 : vector<8x128xi1>, vector<8x128xf32>
    %32 = vector.broadcast %28 : vector<1x128xf32> to vector<8x128xf32>
    %33 = arith.addf %31, %32 : vector<8x128xf32>
    %34 = math.exp %33 : vector<8x128xf32>
    %35 = arith.extui %17 : vector<8x128xi1> to vector<8x128xi32>
    %36 = arith.sitofp %35 : vector<8x128xi32> to vector<8x128xf32>
    %37 = arith.extui %25 : vector<8x128xi1> to vector<8x128xi32>
    %38 = arith.sitofp %37 : vector<8x128xi32> to vector<8x128xf32>
    %c0_14 = arith.constant 0 : index
    %c0_15 = arith.constant 0 : index
    %39 = vector.load %arg7[%c0_14, %c0_15] : memref<1x128xf32, #tpu.memory_space<vmem>>, vector<1x128xf32>
    %40 = arith.mulf %34, %36 : vector<8x128xf32>
    %cst_16 = arith.constant dense<0.000000e+00> : vector<128xf32>
    %41 = vector.multi_reduction <add>, %40, %cst_16 [0] : vector<8x128xf32> to vector<128xf32>
    %42 = vector.shape_cast %41 : vector<128xf32> to vector<1x128xf32>
    %43 = arith.addf %39, %42 : vector<1x128xf32>
    %c0_17 = arith.constant 0 : index
    %c0_18 = arith.constant 0 : index
    %44 = vector.load %arg7[%c0_17, %c0_18] : memref<1x128xf32, #tpu.memory_space<vmem>>, vector<1x128xf32>
    tpu.vector_store %arg7[%c0_17, %c0_18], %43 {strides = array<i32>} : memref<1x128xf32, #tpu.memory_space<vmem>>, vector<1x128xf32>,
    %c0_19 = arith.constant 0 : index
    %c0_20 = arith.constant 0 : index
    %45 = vector.load %arg8[%c0_19, %c0_20] : memref<1x128xf32, #tpu.memory_space<vmem>>, vector<1x128xf32>
    %46 = arith.mulf %34, %38 : vector<8x128xf32>
    %cst_21 = arith.constant dense<0.000000e+00> : vector<128xf32>
    %47 = vector.multi_reduction <add>, %46, %cst_21 [0] : vector<8x128xf32> to vector<128xf32>
    %48 = vector.shape_cast %47 : vector<128xf32> to vector<1x128xf32>
    %49 = arith.addf %45, %48 : vector<1x128xf32>
    %c0_22 = arith.constant 0 : index
    %c0_23 = arith.constant 0 : index
    %50 = vector.load %arg8[%c0_22, %c0_23] : memref<1x128xf32, #tpu.memory_space<vmem>>, vector<1x128xf32>
    tpu.vector_store %arg8[%c0_22, %c0_23], %49 {strides = array<i32>} : memref<1x128xf32, #tpu.memory_space<vmem>>, vector<1x128xf32>,
    %c0_24 = arith.constant 0 : index
    %c0_25 = arith.constant 0 : index
    %51 = vector.load %arg9[%c0_24, %c0_25] : memref<1x128xf32, #tpu.memory_space<vmem>>, vector<1x128xf32>
    %cst_26 = arith.constant dense<0.000000e+00> : vector<128xf32>
    %52 = vector.multi_reduction <add>, %36, %cst_26 [0] : vector<8x128xf32> to vector<128xf32>
    %53 = vector.shape_cast %52 : vector<128xf32> to vector<1x128xf32>
    %54 = arith.addf %51, %53 : vector<1x128xf32>
    %c0_27 = arith.constant 0 : index
    %c0_28 = arith.constant 0 : index
    %55 = vector.load %arg9[%c0_27, %c0_28] : memref<1x128xf32, #tpu.memory_space<vmem>>, vector<1x128xf32>
    tpu.vector_store %arg9[%c0_27, %c0_28], %54 {strides = array<i32>} : memref<1x128xf32, #tpu.memory_space<vmem>>, vector<1x128xf32>,
    %c0_i32_29 = arith.constant 0 : i32
    %56 = arith.cmpi eq, %arg0, %c0_i32_29 : i32
    %57 = arith.extui %56 : i1 to i32
    %c0_i32_30 = arith.constant 0 : i32
    %58 = arith.cmpi ne, %57, %c0_i32_30 : i32
    scf.if %58 {
      %c0_31 = arith.constant 0 : index
      %c0_32 = arith.constant 0 : index
      %59 = vector.load %arg7[%c0_31, %c0_32] : memref<1x128xf32, #tpu.memory_space<vmem>>, vector<1x128xf32>
      %c0_33 = arith.constant 0 : index
      %c0_34 = arith.constant 0 : index
      %60 = vector.load %arg8[%c0_33, %c0_34] : memref<1x128xf32, #tpu.memory_space<vmem>>, vector<1x128xf32>
      %c0_35 = arith.constant 0 : index
      %c0_36 = arith.constant 0 : index
      %61 = vector.load %arg9[%c0_35, %c0_36] : memref<1x128xf32, #tpu.memory_space<vmem>>, vector<1x128xf32>
      %cst_37 = arith.constant 0.000000e+00 : f32
      %62 = vector.broadcast %cst_37 : f32 to vector<1x128xf32>
      %63 = arith.cmpf one, %61, %62 : vector<1x128xf32>
      %64 = arith.extui %63 : vector<1x128xi1> to vector<1x128xi32>
      %65 = arith.sitofp %64 : vector<1x128xi32> to vector<1x128xf32>
      %66 = vector.shape_cast %65 : vector<1x128xf32> to vector<1x1x128xf32>
      %cst_38 = arith.constant dense<0.000000e+00> : vector<1xf32>
      %67 = vector.multi_reduction <add>, %66, %cst_38 [1, 2] : vector<1x1x128xf32> to vector<1xf32>
      %68 = vector.shape_cast %67 : vector<1xf32> to vector<1x1x1xf32>
      %69 = vector.extract %68[0, 0, 0] : f32 from vector<1x1x1xf32>
      %cst_39 = arith.constant 1.000000e+00 : f32
      %70 = vector.broadcast %cst_39 : f32 to vector<1x128xf32>
      %71 = arith.addf %70, %59 : vector<1x128xf32>
      %72 = math.log %71 : vector<1x128xf32>
      %73 = vector.shape_cast %72 : vector<1x128xf32> to vector<1x1x128xf32>
      %cst_40 = arith.constant dense<0.000000e+00> : vector<1xf32>
      %74 = vector.multi_reduction <add>, %73, %cst_40 [1, 2] : vector<1x1x128xf32> to vector<1xf32>
      %75 = vector.shape_cast %74 : vector<1xf32> to vector<1x1x1xf32>
      %76 = vector.extract %75[0, 0, 0] : f32 from vector<1x1x1xf32>
      %77 = arith.divf %76, %69 : f32
      %cst_41 = arith.constant 1.000000e+00 : f32
      %78 = vector.broadcast %cst_41 : f32 to vector<1x128xf32>
      %79 = arith.addf %78, %60 : vector<1x128xf32>
      %80 = math.log %79 : vector<1x128xf32>
      %81 = vector.shape_cast %80 : vector<1x128xf32> to vector<1x1x128xf32>
      %cst_42 = arith.constant dense<0.000000e+00> : vector<1xf32>
      %82 = vector.multi_reduction <add>, %81, %cst_42 [1, 2] : vector<1x1x128xf32> to vector<1xf32>
      %83 = vector.shape_cast %82 : vector<1xf32> to vector<1x1x1xf32>
      %84 = vector.extract %83[0, 0, 0] : f32 from vector<1x1x1xf32>
      %cst_43 = arith.constant 8.000000e+00 : f32
      %85 = arith.divf %84, %cst_43 : f32
      %c0_44 = arith.constant 0 : index
      %c0_45 = arith.constant 0 : index
      %86 = vector.load %arg4[%c0_44, %c0_45] : memref<1x128xf32, #tpu.memory_space<vmem>>, vector<1x128xf32>
      %87 = vector.shape_cast %86 : vector<1x128xf32> to vector<1x1x128xf32>
      %cst_46 = arith.constant dense<0.000000e+00> : vector<1xf32>
      %88 = vector.multi_reduction <add>, %87, %cst_46 [1, 2] : vector<1x1x128xf32> to vector<1xf32>
      %89 = vector.shape_cast %88 : vector<1xf32> to vector<1x1x1xf32>
      %90 = vector.extract %89[0, 0, 0] : f32 from vector<1x1x1xf32>
      %cst_47 = arith.constant 8.000000e+00 : f32
      %91 = arith.divf %90, %cst_47 : f32
      %92 = arith.addf %77, %85 : f32
      %cst_48 = arith.constant 1.000000e+01 : f32
      %93 = arith.divf %cst_48, %91 : f32
      %94 = arith.addf %92, %93 : f32
      %c0_49 = arith.constant 0 : index
      %c0_50 = arith.constant 0 : index
      %95 = memref.load %arg5[%c0_49, %c0_50] : memref<1x1xf32, #tpu.memory_space<smem>>
      memref.store %94, %arg5[%c0_49, %c0_50] : memref<1x1xf32, #tpu.memory_space<smem>>
    } else {
    }
    return
  }
  func.func @transform_0(%arg0: i32) -> (i32, i32) {
    %c0_i32 = arith.constant 0 : i32
    %c0_i32_0 = arith.constant 0 : i32
    return %arg0, %c0_i32 : i32, i32
  }
  func.func @transform_1(%arg0: i32) -> (i32, i32) {
    %c0_i32 = arith.constant 0 : i32
    %c0_i32_0 = arith.constant 0 : i32
    return %arg0, %c0_i32 : i32, i32
  }
  func.func @transform_2(%arg0: i32) -> (i32, i32, i32) {
    %c0_i32 = arith.constant 0 : i32
    %c0_i32_0 = arith.constant 0 : i32
    %c0_i32_1 = arith.constant 0 : i32
    %c0_i32_2 = arith.constant 0 : i32
    return %c0_i32, %c0_i32_0, %c0_i32_1 : i32, i32, i32
  }
  func.func @transform_3(%arg0: i32) -> (i32, i32) {
    %c0_i32 = arith.constant 0 : i32
    %c0_i32_0 = arith.constant 0 : i32
    %c0_i32_1 = arith.constant 0 : i32
    return %c0_i32, %c0_i32_0 : i32, i32
  }
  func.func @transform_4(%arg0: i32) -> (i32, i32) {
    %c0_i32 = arith.constant 0 : i32
    %c0_i32_0 = arith.constant 0 : i32
    %c0_i32_1 = arith.constant 0 : i32
    return %c0_i32, %c0_i32_0 : i32, i32
  }
}

</mosaic_0001>

<bundles_post_ra>
// kernel: tpu_custom_call.1
= control target key start
LH: loop header
LB: loop body
LE: loop exit
PB: predicated region body
PF: predicated region fallthrough
CT: control target
= control target key end

     0   :  { %9 = vsyncpa [#allocation7], 0  ;;  %s1004_s0 = inlined_call_operand.vmem [shape: f32[8,128], index: 0, kind: input, shape index: {}]   ;;  %s1005_s1 = inlined_call_operand.vmem [shape: s32[8,1], index: 1, kind: input, shape index: {}]   ;;  %s1006_s2 = inlined_call_operand.hbm [shape: f32[2,128,128], index: 2, kind: input, shape index: {}]   ;;  %s1007_s3 = inlined_call_operand.vmem [shape: f32[1,128], index: 3, kind: input, shape index: {}]   ;;  %s1008_s4 = inlined_call_operand.hbm [shape: f32[1,1], index: 4, kind: output, shape index: {}]  }
   0x1   :  { %10 = vsyncpa [#allocation8], 0  ;;  %s758_s15 = smov [#allocation6]  }
   0x2   :  { %s20_s16 = sshll.u32 %s758_s15, 4  ;;  %s21_s16 = int_to_ptr.vmem [resolvable:$true] %s20_s16 }
   0x3   :  { %s734_s17 = scalar_lea.vmem %s21_s16, 4096  ;;  %p739_p1 = scmp.lt.s32.totalorder %s21_s16, %s21_s16 }
   0x4   :  { %p735_p0 = scmp.ne.s32.totalorder %s21_s16, %s734_s17  ;;  %p740_p2 = scmp.lt.s32.totalorder %s734_s17, %s734_s17 }
   0x6   :  { %p741_p3 = por %p740_p2, %p739_p1 }
   0x8   :  { %p742_p4 = pnand %p741_p3, %p735_p0 }
   0xa   :  { %745 = shalt.err (!%p742_p4)
}
   0xb   :  { %s759_s18 = smov 128   ;;  %s760_s19 = smov 8  }
   0xc   :  { %26 = dma.hbm_to_vmem [thread:$0]  %s1006_s2, 4096, %s21_s16, [#allocation7], %s759_s18, %s759_s18, %s760_s19  }
   0xd   :  { %754 = dma.done.wait [#allocation7], 4096  }
   0xe   :  { %755 = vsyncadd [#allocation7], 4294963200  ;;  %v794_v0 = vld [vmem:[#allocation6 + $0x78] sm:$0xff]  ;;  %v796_v1 = vld [vmem:[#allocation6 + $0x70] sm:$0xff]  ;;  %v761_v42 = vmov 0.0   ;;  %vm762_vm0 = vmmov 0  }
   0xf   :  { %v798_v2 = vld [vmem:[#allocation6 + $0xf8] sm:$0xff]  ;;  %v67_v3 = vmul.f32 %v794_v0, %v794_v0  ;;  %v66_v4 = vmul.f32 %v796_v1, %v796_v1  ;;  %v804_v5 = vld [vmem:[#allocation6 + $0xf0] sm:$0xff]  ;;  %v810_v8 = vld [vmem:[#allocation6 + $0xe8] sm:$0xff]  ;;  %593 = vmatprep.subr.mxu0 %v761_v42  ;;  %325 = vst [vmem:[#allocation3] sm:$0x1] %v761_v42  ;;  %625 = vmatprep.mubr.msk.f32.mxu0 %vm762_vm0, %v761_v42  ;;  %vm493_vm3 = vcmask 1040384  }
  0x10   :  { %v196_v6 = vmul.f32 %v798_v2, %v798_v2  ;;  %v195_v7 = vmul.f32 %v804_v5, %v804_v5  ;;  %v812_v9 = vld [vmem:[#allocation6 + $0x68] sm:$0xff]  ;;  %v194_v10 = vmul.f32 %v810_v8, %v810_v8  ;;  %v818_v12 = vld [vmem:[#allocation6 + $0xe0] sm:$0xff]  ;;  %v826_v16 = vld [vmem:[#allocation6 + $0xd8] sm:$0xff]  ;;  %326 = vst [vmem:[#allocation4] sm:$0x1] %v761_v42  ;;  %vm764_vm7 = vmmov 1  }
  0x11   :  { %98 = vadd.xlane.f32.xlu0 %v67_v3  ;;  %96 = vadd.xlane.f32.xlu1 %v66_v4  ;;  %v65_v11 = vmul.f32 %v812_v9, %v812_v9  ;;  %v820_v13 = vld [vmem:[#allocation6 + $0x60] sm:$0xff]  ;;  %v193_v14 = vmul.f32 %v818_v12, %v818_v12  ;;  %v828_v17 = vld [vmem:[#allocation6 + $0x58] sm:$0xff]  ;;  %v192_v18 = vmul.f32 %v826_v16, %v826_v16  ;;  %v834_v20 = vld [vmem:[#allocation6 + $0xd0] sm:$0xff]  ;;  %s765_s12 = smov [#allocation9]  }
  0x12   :  { %v64_v15 = vmul.f32 %v820_v13, %v820_v13  ;;  %v63_v19 = vmul.f32 %v828_v17, %v828_v17  ;;  %v836_v21 = vld [vmem:[#allocation6 + $0x50] sm:$0xff]  ;;  %v191_v22 = vmul.f32 %v834_v20, %v834_v20  ;;  %v842_v24 = vld [vmem:[#allocation6 + $0xc8] sm:$0xff]  ;;  %v850_v28 = vld [vmem:[#allocation6 + $0xc0] sm:$0xff]  ;;  %327 = vst [vmem:[#allocation5] sm:$0x1] %v761_v42 }
  0x13   :  { %v62_v23 = vmul.f32 %v836_v21, %v836_v21  ;;  %v844_v25 = vld [vmem:[#allocation6 + $0x48] sm:$0xff]  ;;  %v190_v26 = vmul.f32 %v842_v24, %v842_v24  ;;  %v852_v29 = vld [vmem:[#allocation6 + $0x40] sm:$0xff]  ;;  %v189_v30 = vmul.f32 %v850_v28, %v850_v28  ;;  %v858_v32 = vld [vmem:[#allocation6 + $0xb8] sm:$0xff] }
  0x14   :  { %v61_v27 = vmul.f32 %v844_v25, %v844_v25  ;;  %v60_v31 = vmul.f32 %v852_v29, %v852_v29  ;;  %v860_v33 = vld [vmem:[#allocation6 + $0x38] sm:$0xff]  ;;  %v188_v34 = vmul.f32 %v858_v32, %v858_v32  ;;  %v866_v36 = vld [vmem:[#allocation6 + $0xb0] sm:$0xff]  ;;  %v874_v40 = vld [vmem:[#allocation6 + $0xa8] sm:$0xff] }
  0x15   :  { %227 = vadd.xlane.f32.xlu0 %v196_v6  ;;  %225 = vadd.xlane.f32.xlu1 %v195_v7  ;;  %v59_v35 = vmul.f32 %v860_v33, %v860_v33  ;;  %v868_v37 = vld [vmem:[#allocation6 + $0x30] sm:$0xff]  ;;  %v187_v38 = vmul.f32 %v866_v36, %v866_v36  ;;  %v876_v41 = vld [vmem:[#allocation6 + $0x28] sm:$0xff]  ;;  %v186_v43 = vmul.f32 %v874_v40, %v874_v40  ;;  %v886_v45 = vld [vmem:[#allocation6 + $0xa0] sm:$0xff] }
  0x16   :  { %v58_v39 = vmul.f32 %v868_v37, %v868_v37  ;;  %v57_v44 = vmul.f32 %v876_v41, %v876_v41  ;;  %v888_v46 = vld [vmem:[#allocation6 + $0x20] sm:$0xff]  ;;  %v185_v47 = vmul.f32 %v886_v45, %v886_v45  ;;  %v894_v49 = vld [vmem:[#allocation6 + $0x98] sm:$0xff]  ;;  %v902_v53 = vld [vmem:[#allocation6 + $0x90] sm:$0xff] }
  0x17   :  { %v56_v48 = vmul.f32 %v888_v46, %v888_v46  ;;  %v896_v50 = vld [vmem:[#allocation6 + $0x18] sm:$0xff]  ;;  %v184_v51 = vmul.f32 %v894_v49, %v894_v49  ;;  %v904_v54 = vld [vmem:[#allocation6 + $0x10] sm:$0xff]  ;;  %v183_v55 = vmul.f32 %v902_v53, %v902_v53  ;;  %v910_v57 = vld [vmem:[#allocation6 + $0x88] sm:$0xff] }
  0x18   :  { %v55_v52 = vmul.f32 %v896_v50, %v896_v50  ;;  %v54_v56 = vmul.f32 %v904_v54, %v904_v54  ;;  %v912_v58 = vld [vmem:[#allocation6 + $0x8] sm:$0xff]  ;;  %v182_v59 = vmul.f32 %v910_v57, %v910_v57  ;;  %v918_v61 = vld [vmem:[#allocation6 + $0x80] sm:$0xff] }
  0x19   :  { %223 = vadd.xlane.f32.xlu1 %v194_v10  ;;  %94 = vadd.xlane.f32.xlu0 %v65_v11  ;;  %v53_v60 = vmul.f32 %v912_v58, %v912_v58  ;;  %v920_v62 = vld [vmem:[#allocation6] sm:$0xff]  ;;  %v181_v63 = vmul.f32 %v918_v61, %v918_v61  ;;  %v763_v10 = vmov 0  }
  0x1a   :  { %v52_v3 = vmul.f32 %v920_v62, %v920_v62  ;;  %v929_v4 = vld [vmem:[%s1004_s0] sm:$0xff]  ;;  %648 = vset.pattern.permute.xlu1 %v763_v10  ;;  %649 = vset.pattern.permute.xlu0 %v763_v10 }
  0x1b   :  { %v329_v6 = vmul.f32 %v929_v4, %v929_v4  ;;  %v421_v7 = vld [vmem:[%s1005_s1] sm:$0xff] }
  0x1c   :  { %vm428_vm1 = vcmp.ge.s32.totalorder %v421_v7, 0 }
  0x1d   :  { %221 = vadd.xlane.f32.xlu1 %v193_v14  ;;  %92 = vadd.xlane.f32.xlu0 %v64_v15  ;;  %v431_v11 = vsel %vm428_vm1, 1, %v763_v10 }
  0x21   :  { %219 = vadd.xlane.f32.xlu1 %v192_v18  ;;  %90 = vadd.xlane.f32.xlu0 %v63_v19 }
  0x25   :  { %217 = vadd.xlane.f32.xlu1 %v191_v22  ;;  %88 = vadd.xlane.f32.xlu0 %v62_v23 }
  0x29   :  { %215 = vadd.xlane.f32.xlu1 %v190_v26  ;;  %86 = vadd.xlane.f32.xlu0 %v61_v27 }
  0x2d   :  { %213 = vadd.xlane.f32.xlu1 %v189_v30  ;;  %84 = vadd.xlane.f32.xlu0 %v60_v31 }
  0x31   :  { %211 = vadd.xlane.f32.xlu1 %v188_v34  ;;  %82 = vadd.xlane.f32.xlu0 %v59_v35 }
  0x35   :  { %209 = vadd.xlane.f32.xlu1 %v187_v38  ;;  %80 = vadd.xlane.f32.xlu0 %v58_v39 }
  0x39   :  { %207 = vadd.xlane.f32.xlu1 %v186_v43  ;;  %78 = vadd.xlane.f32.xlu0 %v57_v44 }
  0x3d   :  { %205 = vadd.xlane.f32.xlu1 %v185_v47  ;;  %76 = vadd.xlane.f32.xlu0 %v56_v48 }
  0x41   :  { %203 = vadd.xlane.f32.xlu1 %v184_v51  ;;  %74 = vadd.xlane.f32.xlu0 %v55_v52 }
  0x45   :  { %201 = vadd.xlane.f32.xlu1 %v183_v55  ;;  %72 = vadd.xlane.f32.xlu0 %v54_v56 }
  0x49   :  { %199 = vadd.xlane.f32.xlu1 %v182_v59  ;;  %70 = vadd.xlane.f32.xlu0 %v53_v60 }
  0x4d   :  { %197 = vadd.xlane.f32.xlu1 %v181_v63  ;;  %68 = vadd.xlane.f32.xlu0 %v52_v3 }
  0x51   :  { %330 = vadd.xlane.f32.xlu0 %v329_v6 }
  0x5e   :  { %425 = vperm.xlu1 %648, %v421_v7  }
  0x67   :  { %433 = vperm.xlu0 %649, %v431_v11  }
  0x9a   :  { %v99_v14 = vpop.xlane.xlu0 %98  ;;  %v97_v15 = vpop.xlane.xlu1 %96 }
  0x9b   :  { %v115_v18 = vadd.f32 1e-12, %v99_v14  ;;  %v114_v19 = vadd.f32 1e-12, %v97_v15 }
  0x9d   :  { %650 = vrsqrt.f32 %v114_v19 }
  0x9e   :  { %v228_v22 = vpop.xlane.xlu0 %227  ;;  %v226_v23 = vpop.xlane.xlu1 %225  ;;  %652 = vrsqrt.f32 %v115_v18 }
  0x9f   :  { %v244_v26 = vadd.f32 1e-12, %v228_v22  ;;  %v243_v27 = vadd.f32 1e-12, %v226_v23 }
  0xa1   :  { %654 = vrsqrt.f32 %v244_v26 }
  0xa2   :  { %656 = vrsqrt.f32 %v243_v27  ;;  %v224_v30 = vpop.xlane.xlu1 %223  ;;  %v95_v31 = vpop.xlane.xlu0 %94 }
  0xa3   :  { %v242_v34 = vadd.f32 1e-12, %v224_v30  ;;  %v113_v35 = vadd.f32 1e-12, %v95_v31 }
  0xa5   :  { %658 = vrsqrt.f32 %v242_v34 }
  0xa6   :  { %660 = vrsqrt.f32 %v113_v35  ;;  %v222_v38 = vpop.xlane.xlu1 %221  ;;  %v93_v39 = vpop.xlane.xlu0 %92 }
  0xa7   :  { %v241_v43 = vadd.f32 1e-12, %v222_v38  ;;  %v112_v44 = vadd.f32 1e-12, %v93_v39 }
  0xa9   :  { %662 = vrsqrt.f32 %v241_v43 }
  0xaa   :  { %664 = vrsqrt.f32 %v112_v44  ;;  %v220_v47 = vpop.xlane.xlu1 %219  ;;  %v91_v48 = vpop.xlane.xlu0 %90 }
  0xab   :  { %v651_v51 = vpop.eup %650  ;;  %v240_v52 = vadd.f32 1e-12, %v220_v47  ;;  %v111_v55 = vadd.f32 1e-12, %v91_v48 }
  0xac   :  { %v653_v56 = vpop.eup %652  ;;  %v146_v3 = vmul.f32 %v651_v51, %v796_v1 }
  0xad   :  { %666 = vrsqrt.f32 %v240_v52  ;;  %v147_v11 = vmul.f32 %v653_v56, %v794_v0 }
  0xae   :  { %v655_v59 = vpop.eup %654  ;;  %668 = vrsqrt.f32 %v111_v55  ;;  %v218_v60 = vpop.xlane.xlu1 %217 }
  0xaf   :  { %v89_v63 = vpop.xlane.xlu0 %88  ;;  %v657_v6 = vpop.eup %656  ;;  %v239_v7 = vadd.f32 1e-12, %v218_v60  ;;  %v276_v14 = vmul.f32 %v655_v59, %v798_v2 }
  0xb0   :  { %v110_v10 = vadd.f32 1e-12, %v89_v63  ;;  %v275_v15 = vmul.f32 %v657_v6, %v804_v5 }
  0xb1   :  { %670 = vrsqrt.f32 %v239_v7  ;;  %v292_v18 = vadd.f32 %v276_v14, %v147_v11 }
  0xb2   :  { %v659_v19 = vpop.eup %658  ;;  %672 = vrsqrt.f32 %v110_v10  ;;  %v216_v22 = vpop.xlane.xlu1 %215  ;;  %v291_v26 = vadd.f32 %v275_v15, %v146_v3 }
  0xb3   :  { %v87_v23 = vpop.xlane.xlu0 %86  ;;  %v661_v27 = vpop.eup %660  ;;  %v308_v30 = vmul.f32 16.0, %v292_v18  ;;  %v238_v31 = vadd.f32 1e-12, %v216_v22  ;;  %v274_v34 = vmul.f32 %v659_v19, %v810_v8 }
  0xb4   :  { %v109_v1 = vadd.f32 1e-12, %v87_v23  ;;  %v145_v35 = vmul.f32 %v661_v27, %v812_v9  ;;  %v307_v43 = vmul.f32 16.0, %v291_v26 }
  0xb5   :  { %594 = vmatpush3.xpose.msra.mxu0 %v308_v30  ;;  %674 = vrsqrt.f32 %v238_v31 }
  0xb6   :  { %v663_v0 = vpop.eup %662  ;;  %676 = vrsqrt.f32 %v109_v1  ;;  %595 = vmatprep.subr.mxu0 %v761_v42  ;;  %v214_v2 = vpop.xlane.xlu1 %213  ;;  %v290_v38 = vadd.f32 %v274_v34, %v145_v35 }
  0xb7   :  { %v85_v5 = vpop.xlane.xlu0 %84  ;;  %v665_v39 = vpop.eup %664  ;;  %v237_v44 = vadd.f32 1e-12, %v214_v2  ;;  %v273_v48 = vmul.f32 %v663_v0, %v818_v12 }
  0xb8   :  { %v108_v47 = vadd.f32 1e-12, %v85_v5  ;;  %v144_v51 = vmul.f32 %v665_v39, %v820_v13  ;;  %v306_v8 = vmul.f32 16.0, %v290_v38 }
  0xb9   :  { %596 = vmatpush3.xpose.msra.mxu0 %v307_v43  ;;  %678 = vrsqrt.f32 %v237_v44 }
  0xba   :  { %v667_v9 = vpop.eup %666  ;;  %680 = vrsqrt.f32 %v108_v47  ;;  %597 = vmatprep.subr.mxu0 %v761_v42  ;;  %v212_v52 = vpop.xlane.xlu1 %211  ;;  %v289_v56 = vadd.f32 %v273_v48, %v144_v51 }
  0xbb   :  { %v83_v55 = vpop.xlane.xlu0 %82  ;;  %v669_v59 = vpop.eup %668  ;;  %v236_v60 = vadd.f32 1e-12, %v212_v52  ;;  %v272_v3 = vmul.f32 %v667_v9, %v826_v16 }
  0xbc   :  { %v107_v63 = vadd.f32 1e-12, %v83_v55  ;;  %v143_v6 = vmul.f32 %v669_v59, %v828_v17  ;;  %v305_v12 = vmul.f32 16.0, %v289_v56 }
  0xbd   :  { %598 = vmatpush3.xpose.msra.mxu0 %v306_v8  ;;  %682 = vrsqrt.f32 %v236_v60 }
  0xbe   :  { %v671_v13 = vpop.eup %670  ;;  %684 = vrsqrt.f32 %v107_v63  ;;  %599 = vmatprep.subr.mxu0 %v761_v42  ;;  %v210_v7 = vpop.xlane.xlu1 %209  ;;  %v288_v11 = vadd.f32 %v272_v3, %v143_v6 }
  0xbf   :  { %v81_v10 = vpop.xlane.xlu0 %80  ;;  %v673_v14 = vpop.eup %672  ;;  %v235_v15 = vadd.f32 1e-12, %v210_v7  ;;  %v271_v19 = vmul.f32 %v671_v13, %v834_v20 }
  0xc0   :  { %v106_v18 = vadd.f32 1e-12, %v81_v10  ;;  %v142_v22 = vmul.f32 %v673_v14, %v836_v21  ;;  %v304_v16 = vmul.f32 16.0, %v288_v11 }
  0xc1   :  { %600 = vmatpush3.xpose.msra.mxu0 %v305_v12  ;;  %686 = vrsqrt.f32 %v235_v15 }
  0xc2   :  { %v675_v17 = vpop.eup %674  ;;  %688 = vrsqrt.f32 %v106_v18  ;;  %601 = vmatprep.subr.mxu0 %v761_v42  ;;  %v208_v23 = vpop.xlane.xlu1 %207  ;;  %v287_v27 = vadd.f32 %v271_v19, %v142_v22 }
  0xc3   :  { %v79_v26 = vpop.xlane.xlu0 %78  ;;  %v677_v30 = vpop.eup %676  ;;  %v234_v31 = vadd.f32 1e-12, %v208_v23  ;;  %v270_v34 = vmul.f32 %v675_v17, %v842_v24 }
  0xc4   :  { %v105_v1 = vadd.f32 1e-12, %v79_v26  ;;  %v141_v35 = vmul.f32 %v677_v30, %v844_v25  ;;  %v303_v20 = vmul.f32 16.0, %v287_v27 }
  0xc5   :  { %602 = vmatpush3.xpose.msra.mxu0 %v304_v16  ;;  %690 = vrsqrt.f32 %v234_v31 }
  0xc6   :  { %v679_v21 = vpop.eup %678  ;;  %692 = vrsqrt.f32 %v105_v1  ;;  %603 = vmatprep.subr.mxu0 %v761_v42  ;;  %v206_v0 = vpop.xlane.xlu1 %205  ;;  %v286_v5 = vadd.f32 %v270_v34, %v141_v35 }
  0xc7   :  { %v77_v2 = vpop.xlane.xlu0 %76  ;;  %v681_v38 = vpop.eup %680  ;;  %v233_v39 = vadd.f32 1e-12, %v206_v0  ;;  %v269_v44 = vmul.f32 %v679_v21, %v850_v28 }
  0xc8   :  { %v104_v43 = vadd.f32 1e-12, %v77_v2  ;;  %v140_v47 = vmul.f32 %v681_v38, %v852_v29  ;;  %v302_v24 = vmul.f32 16.0, %v286_v5 }
  0xc9   :  { %604 = vmatpush3.xpose.msra.mxu0 %v303_v20  ;;  %694 = vrsqrt.f32 %v233_v39 }
  0xca   :  { %v683_v25 = vpop.eup %682  ;;  %696 = vrsqrt.f32 %v104_v43  ;;  %605 = vmatprep.subr.mxu0 %v761_v42  ;;  %v204_v48 = vpop.xlane.xlu1 %203  ;;  %v285_v8 = vadd.f32 %v269_v44, %v140_v47 }
  0xcb   :  { %v75_v51 = vpop.xlane.xlu0 %74  ;;  %v685_v9 = vpop.eup %684  ;;  %v232_v52 = vadd.f32 1e-12, %v204_v48  ;;  %v268_v56 = vmul.f32 %v683_v25, %v858_v32 }
  0xcc   :  { %v103_v55 = vadd.f32 1e-12, %v75_v51  ;;  %v139_v59 = vmul.f32 %v685_v9, %v860_v33  ;;  %v301_v28 = vmul.f32 16.0, %v285_v8 }
  0xcd   :  { %606 = vmatpush3.xpose.msra.mxu0 %v302_v24  ;;  %698 = vrsqrt.f32 %v232_v52 }
  0xce   :  { %v687_v29 = vpop.eup %686  ;;  %700 = vrsqrt.f32 %v103_v55  ;;  %607 = vmatprep.subr.mxu0 %v761_v42  ;;  %v202_v60 = vpop.xlane.xlu1 %201  ;;  %v284_v3 = vadd.f32 %v268_v56, %v139_v59 }
  0xcf   :  { %v73_v63 = vpop.xlane.xlu0 %72  ;;  %v689_v6 = vpop.eup %688  ;;  %v231_v12 = vadd.f32 1e-12, %v202_v60  ;;  %v267_v7 = vmul.f32 %v687_v29, %v866_v36 }
  0xd0   :  { %v102_v13 = vadd.f32 1e-12, %v73_v63  ;;  %v138_v10 = vmul.f32 %v689_v6, %v868_v37  ;;  %v300_v32 = vmul.f32 16.0, %v284_v3 }
  0xd1   :  { %608 = vmatpush3.xpose.msra.mxu0 %v301_v28  ;;  %702 = vrsqrt.f32 %v231_v12  ;;  %v422_v28 = vlaneseq }
  0xd2   :  { %v691_v33 = vpop.eup %690  ;;  %704 = vrsqrt.f32 %v102_v13  ;;  %609 = vmatprep.subr.mxu0 %v761_v42  ;;  %v200_v11 = vpop.xlane.xlu1 %199  ;;  %v283_v15 = vadd.f32 %v267_v7, %v138_v10  ;;  %v475_v7 = vld [vmem:[#allocation5] sm:$0x1] }
  0xd3   :  { %v71_v14 = vpop.xlane.xlu0 %70  ;;  %v693_v18 = vpop.eup %692  ;;  %v230_v19 = vadd.f32 1e-12, %v200_v11  ;;  %v266_v16 = vmul.f32 %v691_v33, %v874_v40  ;;  %v423_v29 = vand.u32 127, %v422_v28 }
  0xd4   :  { %v101_v22 = vadd.f32 1e-12, %v71_v14  ;;  %v137_v17 = vmul.f32 %v693_v18, %v876_v41  ;;  %v299_v36 = vmul.f32 16.0, %v283_v15 }
  0xd5   :  { %610 = vmatpush3.xpose.msra.mxu0 %v300_v32  ;;  %706 = vrsqrt.f32 %v230_v19  ;;  %vm429_vm5 = vcmp.lt.s32.totalorder %v423_v29, 8 }
  0xd6   :  { %v695_v37 = vpop.eup %694  ;;  %708 = vrsqrt.f32 %v101_v22  ;;  %611 = vmatprep.subr.mxu0 %v761_v42  ;;  %v198_v23 = vpop.xlane.xlu1 %197  ;;  %v282_v27 = vadd.f32 %v266_v16, %v137_v17 }
  0xd7   :  { %v69_v26 = vpop.xlane.xlu0 %68  ;;  %v697_v30 = vpop.eup %696  ;;  %v229_v31 = vadd.f32 1e-12, %v198_v23  ;;  %v265_v34 = vmul.f32 %v695_v37, %v886_v45  ;;  %v438_v37 = vld [vmem:[%s1007_s3] sm:$0x1] }
  0xd8   :  { %v100_v1 = vadd.f32 1e-12, %v69_v26  ;;  %v136_v35 = vmul.f32 %v697_v30, %v888_v46  ;;  %v298_v40 = vmul.f32 16.0, %v282_v27  ;;  %v439_v23 = vmul.f32 32.0, %v438_v37 }
  0xd9   :  { %612 = vmatpush3.xpose.msra.mxu0 %v299_v36  ;;  %710 = vrsqrt.f32 %v229_v31  ;;  %v444_v36 = vshrl.u32 %v422_v28, 7 }
  0xda   :  { %v699_v41 = vpop.eup %698  ;;  %712 = vrsqrt.f32 %v100_v1  ;;  %613 = vmatprep.subr.mxu0 %v761_v42  ;;  %v281_v20 = vadd.f32 %v265_v34, %v136_v35  ;;  %v426_v63 = vpop.permute.xlu1 %425 }
  0xdb   :  { %v331_v21 = vpop.xlane.xlu0 %330  ;;  %v701_v0 = vpop.eup %700  ;;  %v264_v2 = vmul.f32 %v699_v41, %v894_v49  ;;  %vm427_vm2 = vcmp.eq.s32.totalorder %v426_v63, %v423_v29  ;;  %v445_v26 = vsub.s32 0, %v444_v36 }
  0xdc   :  { %v332_v5 = vadd.f32 1e-12, %v331_v21  ;;  %v135_v38 = vmul.f32 %v701_v0, %v896_v50  ;;  %v297_v39 = vmul.f32 16.0, %v281_v20  ;;  %vm430_vm8 = vmxor %vm427_vm2, %vm764_vm7 }
  0xdd   :  { %614 = vmatpush3.xpose.msra.mxu0 %v298_v40  ;;  %v446_v30 = vrot.slane %v439_v23, %v445_v26 }
  0xde   :  { %v703_v45 = vpop.eup %702  ;;  %615 = vmatprep.subr.mxu0 %v761_v42  ;;  %v280_v46 = vadd.f32 %v264_v2, %v135_v38  ;;  %714 = vrsqrt.f32 %v332_v5 }
  0xdf   :  { %v705_v43 = vpop.eup %704  ;;  %v263_v44 = vmul.f32 %v703_v45, %v902_v53 }
  0xe0   :  { %v134_v47 = vmul.f32 %v705_v43, %v904_v54  ;;  %v296_v24 = vmul.f32 16.0, %v280_v46 }
  0xe1   :  { %616 = vmatpush3.xpose.msra.mxu0 %v297_v39 }
  0xe2   :  { %v707_v25 = vpop.eup %706  ;;  %617 = vmatprep.subr.mxu0 %v761_v42  ;;  %v279_v49 = vadd.f32 %v263_v44, %v134_v47  ;;  %v434_v41 = vpop.permute.xlu0 %433 }
  0xe3   :  { %v709_v48 = vpop.eup %708  ;;  %v262_v50 = vmul.f32 %v707_v25, %v910_v57  ;;  %vm435_vm6 = vcmp.eq.s32.totalorder %v434_v41, 1 }
  0xe4   :  { %v133_v51 = vmul.f32 %v709_v48, %v912_v58  ;;  %v295_v8 = vmul.f32 16.0, %v279_v49  ;;  %vm436_vm9 = vmand %vm435_vm6, %vm429_vm5  ;;  %v455_v49 = vld [vmem:[#allocation3] sm:$0x1]  ;;  %v465_v48 = vld [vmem:[#allocation4] sm:$0x1] }
  0xe5   :  { %618 = vmatpush3.xpose.msra.mxu0 %v296_v24  ;;  %vm437_vm10 = vmand %vm430_vm8, %vm436_vm9 }
  0xe6   :  { %v711_v9 = vpop.eup %710  ;;  %619 = vmatprep.subr.mxu0 %v761_v42  ;;  %v278_v53 = vadd.f32 %v262_v50, %v133_v51  ;;  %v574_v21 = vsel %vm437_vm10, 1.0, %v761_v42 }
  0xe7   :  { %v713_v52 = vpop.eup %712  ;;  %v261_v54 = vmul.f32 %v711_v9, %v918_v61  ;;  %v573_v61 = vsel %vm427_vm2, 1.0, %v761_v42 }
  0xe8   :  { %v132_v55 = vmul.f32 %v713_v52, %v920_v62  ;;  %v294_v56 = vmul.f32 16.0, %v278_v53  ;;  %v476_v62 = vrot.slane %v573_v61, 4 }
  0xe9   :  { %620 = vmatpush3.xpose.msra.mxu0 %v295_v8 }
  0xea   :  { %621 = vmatprep.subr.mxu0 %v761_v42  ;;  %v277_v59 = vadd.f32 %v261_v54, %v132_v55  ;;  %v477_v3 = vadd.f32 %v573_v61, %v476_v62 }
  0xeb   :  { %v715_v57 = vpop.eup %714 }
  0xec   :  { %v293_v58 = vmul.f32 16.0, %v277_v59  ;;  %v334_v60 = vmul.f32 %v715_v57, %v929_v4  ;;  %v478_v6 = vrot.slane %v477_v3, 2 }
  0xed   :  { %622 = vmatpush3.xpose.msra.mxu0 %v294_v56 }
  0xee   :  { %623 = vmatprep.subr.mxu0 %v761_v42  ;;  %v479_v12 = vadd.f32 %v478_v6, %v477_v3 }
  0xf0   :  { %v480_v13 = vrot.slane %v479_v12, 1 }
  0xf1   :  { %624 = vmatpush3.xpose.msra.mxu0 %v293_v58  ;;  %v537_v58 = vld [vmem:[%s1007_s3] sm:$0x1] }
  0xf2   :  { %v481_v10 = vadd.f32 %v480_v13, %v479_v12 }
  0xf4   :  { %626 = vmatmul.mubr.f32.vlgmr.msra.gmra.mxu0 %v334_v60  ;;  %v482_v32 = vadd.f32 %v481_v10, %v475_v7  ;;  %v538_v60 = vsel %vm493_vm3, %v537_v58, 0.0 }
  0xf6   :  { %483 = vst [vmem:[#allocation5] sm:$0x1] %v482_v32 }
  0xfd   :  { %v489_v33 = vld [vmem:[#allocation5] sm:$0x1] }
  0xfe   :  { %vm490_vm4 = vcmp.ne.f32.partialorder %v489_v33, 0.0 }
  0xff   :  { %v575_v4 = vsel %vm490_vm4, 1.0, %v761_v42 }
 0x100   :  { %v494_v11 = vsel %vm493_vm3, %v575_v4, 0.0 }
 0x101   :  { %495 = vadd.xlane.f32.xlu1 %v494_v11 }
 0x18a   :  { %v496_v14 = vpop.xlane.xlu1 %495 }
 0x18b   :  { %v497_v15 = vrot.slane %v496_v14, 4 }
 0x18d   :  { %v498_v18 = vadd.f32 %v497_v15, %v496_v14 }
 0x18f   :  { %v499_v19 = vrot.slane %v498_v18, 2 }
 0x191   :  { %v500_v22 = vadd.f32 %v499_v19, %v498_v18 }
 0x193   :  { %v501_v16 = vrot.slane %v500_v22, 1 }
 0x195   :  { %v502_v17 = vadd.f32 %v501_v16, %v500_v22 }
 0x197   :  { %628 = vpush %v502_v17 }
 0x1b4   :  { %v417_v27 = vpop.f32.mrf.mxu0 }
 0x1b5   :  { %v440_v31 = vsub.f32 0.0, %v417_v27 }
 0x1b6   :  { %v627_v1 = vpop.f32.mrf.mxu0 }
 0x1b7   :  { %v441_v34 = vsel %vm427_vm2, %v440_v31, %v417_v27 }
 0x1b8   :  { %v448_v35 = vadd.f32 %v446_v30, %v441_v34 }
 0x1ba   :  { %v449_v40 = vmul.f32 1.442695, %v448_v35 }
 0x1bc   :  { %716 = vpow2.f32 %v449_v40 }
 0x1c8   :  { %s629_s27 = spop %628 }
 0x1c9   :  { %v717_v20 = vpop.eup %716  ;;  %v517_v63 = vstv %s629_s27 }
 0x1ca   :  { %v456_v0 = vmul.f32 %v717_v20, %v573_v61  ;;  %v466_v2 = vmul.f32 %v717_v20, %v574_v21 }
 0x1cc   :  { %v457_v5 = vrot.slane %v456_v0, 4  ;;  %v467_v38 = vrot.slane %v466_v2, 4 }
 0x1ce   :  { %v458_v39 = vadd.f32 %v457_v5, %v456_v0  ;;  %v468_v45 = vadd.f32 %v467_v38, %v466_v2 }
 0x1d0   :  { %v459_v46 = vrot.slane %v458_v39, 2  ;;  %v469_v43 = vrot.slane %v468_v45, 2 }
 0x1d2   :  { %v460_v44 = vadd.f32 %v459_v46, %v458_v39  ;;  %v470_v47 = vadd.f32 %v469_v43, %v468_v45 }
 0x1d4   :  { %v461_v24 = vrot.slane %v460_v44, 1  ;;  %v471_v25 = vrot.slane %v470_v47, 1 }
 0x1d6   :  { %v462_v50 = vadd.f32 %v461_v24, %v460_v44  ;;  %v472_v51 = vadd.f32 %v471_v25, %v470_v47 }
 0x1d8   :  { %v463_v8 = vadd.f32 %v462_v50, %v455_v49  ;;  %v473_v9 = vadd.f32 %v472_v51, %v465_v48 }
 0x1da   :  { %464 = vst [vmem:[#allocation3] sm:$0x1] %v463_v8  ;;  %474 = vst [vmem:[#allocation4] sm:$0x1] %v473_v9 }
 0x1e1   :  { %v487_v42 = vld [vmem:[#allocation3] sm:$0x1]  ;;  %v488_v53 = vld [vmem:[#allocation4] sm:$0x1] }
 0x1e2   :  { %v504_v52 = vadd.f32 1.0, %v487_v42  ;;  %v521_v54 = vadd.f32 1.0, %v488_v53 }
 0x1e4   :  { %718 = vlog2.f32 %v504_v52 }
 0x1e5   :  { %720 = vlog2.f32 %v521_v54 }
 0x1e6   :  { %722 = vrcp.f32 %v517_v63 }
 0x1f1   :  { %v719_v55 = vpop.eup %718 }
 0x1f2   :  { %v721_v56 = vpop.eup %720  ;;  %v506_v59 = vmul.f32 0.6931472, %v719_v55 }
 0x1f3   :  { %v523_v28 = vmul.f32 0.6931472, %v721_v56  ;;  %v723_v36 = vpop.eup %722 }
 0x1f4   :  { %v507_v57 = vsel %vm493_vm3, %v506_v59, 0.0 }
 0x1f5   :  { %508 = vadd.xlane.f32.xlu0 %v507_v57  ;;  %v524_v29 = vsel %vm493_vm3, %v523_v28, 0.0 }
 0x1f6   :  { %525 = vadd.xlane.f32.xlu1 %v524_v29 }
 0x1fa   :  { %539 = vadd.xlane.f32.xlu1 %v538_v60 }
 0x27e   :  { %v509_v61 = vpop.xlane.xlu0 %508 }
 0x27f   :  { %v526_v62 = vpop.xlane.xlu1 %525  ;;  %v510_v3 = vrot.slane %v509_v61, 4 }
 0x280   :  { %v527_v6 = vrot.slane %v526_v62, 4 }
 0x281   :  { %v511_v12 = vadd.f32 %v510_v3, %v509_v61 }
 0x282   :  { %v528_v13 = vadd.f32 %v527_v6, %v526_v62 }
 0x283   :  { %v512_v7 = vrot.slane %v511_v12, 2  ;;  %v540_v10 = vpop.xlane.xlu1 %539 }
 0x284   :  { %v529_v32 = vrot.slane %v528_v13, 2  ;;  %v541_v33 = vrot.slane %v540_v10, 4 }
 0x285   :  { %v513_v4 = vadd.f32 %v512_v7, %v511_v12 }
 0x286   :  { %v542_v11 = vadd.f32 %v541_v33, %v540_v10  ;;  %v530_v14 = vadd.f32 %v529_v32, %v528_v13 }
 0x287   :  { %v514_v15 = vrot.slane %v513_v4, 1 }
 0x288   :  { %v543_v18 = vrot.slane %v542_v11, 2  ;;  %v531_v19 = vrot.slane %v530_v14, 1 }
 0x289   :  { %v515_v22 = vadd.f32 %v514_v15, %v513_v4 }
 0x28a   :  { %v544_v16 = vadd.f32 %v543_v18, %v542_v11  ;;  %v532_v17 = vadd.f32 %v531_v19, %v530_v14 }
 0x28b   :  { %630 = vpush %v515_v22 }
 0x28c   :  { %632 = vpush %v723_v36  ;;  %v545_v37 = vrot.slane %v544_v16, 1 }
 0x28d   :  { %634 = vpush %v532_v17 }
 0x28e   :  { %v546_v23 = vadd.f32 %v545_v37, %v544_v16 }
 0x290   :  { %636 = vpush %v546_v23 }
 0x2bc   :  { %s631_s3 = spop %630 }
 0x2bd   :  { %s633_s28 = spop %632 }
 0x2be   :  { %s520_s29 = smul.f32 %s633_s28, %s631_s3  ;;  %s635_s30 = spop %634 }
 0x2bf   :  { %s536_s5 = smul.f32 0.125, %s635_s30 }
 0x2c1   :  { %s551_s6 = sadd.f32 %s536_s5, %s520_s29  ;;  %s637_s7 = spop %636 }
 0x2c2   :  { %s550_s8 = smul.f32 0.125, %s637_s7 }
 0x2c4   :  { %v552_v26 = vstv %s550_s8 }
 0x2c5   :  { %724 = vrcp.f32 %v552_v26 }
 0x2d2   :  { %v725_v27 = vpop.eup %724 }
 0x2d3   :  { %638 = vpush %v725_v27 }
 0x304   :  { %s639_s9 = spop %638 }
 0x305   :  { %s555_s10 = smul.f32 10.0, %s639_s9 }
 0x307   :  { %s556_s11 = sadd.f32 %s555_s10, %s551_s6 }
 0x309   :  { %558 = sst [smem:[#allocation9]] %s556_s11 }
 0x30a   :  { %566 = dma.smem_to_hbm %s765_s12, 16, %s1008_s4, [#allocation8]  }
 0x30b   :  { %756 = dma.done.wait [#allocation8], 16  }
 0x30c   :  { %757 = vsyncadd [#allocation8], 4294967280 }
 0x30d   :  { %570 = sfence }
 0x30e   :  { %571 = vsyncpa [#allocation7], 1 }
 0x30f   :  { %572 = vsyncpa [#allocation8], 1 }

</bundles_post_ra>
